<compile_context>
chip_gen: v7x
topology: tpu7x:2x2x1
jax: 0.10.0
libtpu: 0.0.40
codegen_flags: <defaults>
</compile_context>

<pallas_src>
import jax
import jax.numpy as jnp
from jax.experimental import pallas as pl
from jax.experimental.pallas import tpu as pltpu


def _lws_kernel(w_ref, x_ref, o_ref):
    # w_ref: (1, C) resident scale, x_ref/o_ref: (tile_b, C)
    # Single broadcast multiply on the VPU.
    o_ref[...] = x_ref[...] * w_ref[...]


def _pick_tile_b(B: int, C: int, dtype) -> int:
    """Pick a large, dtype-aligned batch tile that stays under VMEM budget."""
    itemsize = jnp.dtype(dtype).itemsize
    # Packed sublane count: 8 rows per vreg tile for 4-byte dtypes,
    # 16 for 2-byte, 32 for 1-byte.
    pack = max(8, 32 // max(itemsize, 1))
    if B <= pack:
        # Full-extent block is always allowed.
        return B
    # Target ~2 MiB of x per grid step. With double-buffered input + output
    # (~4 buffers) that is ~8 MiB of VMEM — comfortably inside the scoped
    # default on v5e (16 MiB), v6e (32 MiB) and v7x (32 MiB of 64 MiB phys).
    target_bytes = 2 * 1024 * 1024
    rows = target_bytes // max(C * itemsize, 1)
    rows = max(pack, (rows // pack) * pack)   # round down to packing, >= pack
    rows = min(rows, B)
    # Keep rows a multiple of pack unless it covers the whole (small) batch.
    if rows != B:
        rows = max(pack, (rows // pack) * pack)
    return rows


def learnable_weight_scaling(x: jax.Array, learned_norm: jax.Array,
                             *, tile_b: int | None = None) -> jax.Array:
    """Elementwise scale of x (B, C) by learned_norm (1, C)."""
    B, C = x.shape
    assert learned_norm.shape == (1, C)

    if tile_b is None:
        tile_b = _pick_tile_b(B, C, x.dtype)
    tile_b = min(tile_b, B)

    grid = (pl.cdiv(B, tile_b),)

    itemsize = jnp.dtype(x.dtype).itemsize
    cost = pl.CostEstimate(
        flops=B * C,
        transcendentals=0,
        bytes_accessed=(2 * B * C + C) * itemsize,
    )

    return pl.pallas_call(
        _lws_kernel,
        out_shape=jax.ShapeDtypeStruct((B, C), x.dtype),
        grid_spec=pltpu.PrefetchScalarGridSpec(
            num_scalar_prefetch=0,
            grid=grid,
            in_specs=[
                # learned_norm: one resident (1, C) block — fetched once.
                pl.BlockSpec((1, C), lambda i: (0, 0)),
                # x: (tile_b, C) full-width (lane-dense) batch tile.
                pl.BlockSpec((tile_b, C), lambda i: (i, 0)),
            ],
            out_specs=pl.BlockSpec((tile_b, C), lambda i: (i, 0)),
        ),
        compiler_params=pltpu.CompilerParams(
            dimension_semantics=("parallel",)),
        cost_estimate=cost,
    )(learned_norm, x)


if __name__ == "__main__":
    key = jax.random.PRNGKey(0)
    batch, num_classes = 8, 128

    kx, kw = jax.random.split(key)
    x = jax.random.normal(kx, (batch, num_classes), dtype=jnp.float32)
    # Parameter init per module __init__ is torch.ones(1, num_classes); perturb
    # deterministically so the scaling is actually exercised.
    learned_norm = jnp.ones((1, num_classes), dtype=jnp.float32) \
        + 0.1 * jax.random.normal(kw, (1, num_classes), dtype=jnp.float32)

    out = learnable_weight_scaling(x, learned_norm)
    out = jax.block_until_ready(out)

    ref = learned_norm * x
    assert out.shape == (batch, num_classes)
    assert out.dtype == x.dtype
    assert jnp.allclose(out, ref, rtol=1e-6, atol=1e-6)

    print("KERNEL_OK")
</pallas_src>

<mosaic_0001>
module attributes {stable_mosaic.version = 11 : i64} {
  func.func @_lws_kernel(%arg0: i32, %arg1: memref<1x128xf32, #tpu.memory_space<vmem>>, %arg2: memref<8x128xf32, #tpu.memory_space<vmem>>, %arg3: memref<8x128xf32, #tpu.memory_space<vmem>>) attributes {dimension_semantics = [#tpu.dimension_semantics<parallel>], iteration_bounds = array<i64: 1>, scalar_prefetch = 0 : i64, scratch_operands = 0 : i64, tpu.core_type = #tpu.core_type<tc>, window_params = [{pipeline_mode = #tpu.pipeline_mode<synchronous>, transform_indices = @transform_0, window_bounds = array<i64: 1, 128>}, {transform_indices = @transform_1, window_bounds = array<i64: 8, 128>}, {transform_indices = @transform_2, window_bounds = array<i64: 8, 128>}]} {
    %c0 = arith.constant 0 : index
    %c0_0 = arith.constant 0 : index
    %0 = vector.load %arg2[%c0, %c0_0] : memref<8x128xf32, #tpu.memory_space<vmem>>, vector<8x128xf32>
    %c0_1 = arith.constant 0 : index
    %c0_2 = arith.constant 0 : index
    %1 = vector.load %arg1[%c0_1, %c0_2] : memref<1x128xf32, #tpu.memory_space<vmem>>, vector<1x128xf32>
    %2 = vector.broadcast %1 : vector<1x128xf32> to vector<8x128xf32>
    %3 = arith.mulf %0, %2 : vector<8x128xf32>
    %c0_3 = arith.constant 0 : index
    %c0_4 = arith.constant 0 : index
    %4 = vector.load %arg3[%c0_3, %c0_4] : memref<8x128xf32, #tpu.memory_space<vmem>>, vector<8x128xf32>
    tpu.vector_store %arg3[%c0_3, %c0_4], %3 {strides = array<i32>} : memref<8x128xf32, #tpu.memory_space<vmem>>, vector<8x128xf32>,
    return
  }
  func.func @transform_0(%arg0: i32) -> (i32, i32) {
    %c0_i32 = arith.constant 0 : i32
    %c0_i32_0 = arith.constant 0 : i32
    %c0_i32_1 = arith.constant 0 : i32
    return %c0_i32, %c0_i32_0 : i32, i32
  }
  func.func @transform_1(%arg0: i32) -> (i32, i32) {
    %c0_i32 = arith.constant 0 : i32
    %c0_i32_0 = arith.constant 0 : i32
    return %arg0, %c0_i32 : i32, i32
  }
  func.func @transform_2(%arg0: i32) -> (i32, i32) {
    %c0_i32 = arith.constant 0 : i32
    %c0_i32_0 = arith.constant 0 : i32
    return %arg0, %c0_i32 : i32, i32
  }
}

</mosaic_0001>

<bundles_post_ra>
// kernel: tpu_custom_call.1
= control target key start
LH: loop header
LB: loop body
LE: loop exit
PB: predicated region body
PF: predicated region fallthrough
CT: control target
= control target key end

     0   :  { %7 = vsyncpa [#allocation3], 0  ;;  %s192_s0 = inlined_call_operand.hbm [shape: f32[1,128], index: 0, kind: input, shape index: {}]   ;;  %s193_s1 = inlined_call_operand.hbm [shape: f32[8,128], index: 1, kind: input, shape index: {}]   ;;  %s194_s2 = inlined_call_operand.hbm [shape: f32[8,128], index: 2, kind: output, shape index: {}]  }
   0x1   :  { %8 = vsyncpa [#allocation6], 0 }
   0x2   :  { %9 = vsyncpa [#allocation4], 0  ;;  %s138_s9 = smov [#allocation2]   ;;  %s139_s11 = smov [#allocation5]  }
   0x3   :  { %s16_s10 = sshll.u32 %s138_s9, 4  ;;  %s26_s12 = sshll.u32 %s139_s11, 4  ;;  %s17_s10 = int_to_ptr.vmem [resolvable:$true] %s16_s10  ;;  %s27_s12 = int_to_ptr.vmem [resolvable:$true] %s26_s12 }
   0x4   :  { %s66_s15 = scalar_lea.hbm %s192_s0, 16 }
   0x5   :  { %p67_p0 = scmp.ne.s32.totalorder %s192_s0, %s66_s15  ;;  %p70_p1 = scmp.lt.u32.totalorder %s66_s15, %s192_s0 }
   0x7   :  { %p72_p2 = pnand %p70_p1, %p67_p0 }
   0x9   :  { %75 = shalt.err (!%p72_p2)
}
   0xa   :  { %s76_s20 = scalar_lea.vmem %s17_s10, 16  ;;  %s80_s21 = scalar_lea.vmem %s17_s10, 32 }
   0xb   :  { %p77_p3 = scmp.ne.s32.totalorder %s17_s10, %s76_s20  ;;  %p81_p4 = scmp.lt.s32.totalorder %s17_s10, %s17_s10 }
   0xc   :  { %p82_p5 = scmp.lt.s32.totalorder %s80_s21, %s76_s20 }
   0xe   :  { %p83_p6 = por %p82_p5, %p81_p4 }
  0x10   :  { %p84_p7 = pnand %p83_p6, %p77_p3 }
  0x12   :  { %87 = shalt.err (!%p84_p7)
}
  0x13   :  { %19 = dma.hbm_to_vmem [thread:$0]  %s192_s0, 16, %s17_s10, [#allocation3]  }
  0x14   :  { %s88_s26 = scalar_lea.hbm %s193_s1, 128 }
  0x15   :  { %p89_p8 = scmp.ne.s32.totalorder %s193_s1, %s88_s26  ;;  %p92_p9 = scmp.lt.u32.totalorder %s88_s26, %s193_s1 }
  0x17   :  { %p94_p10 = pnand %p92_p9, %p89_p8 }
  0x19   :  { %97 = shalt.err (!%p94_p10)
}
  0x1a   :  { %s98_s3 = scalar_lea.vmem %s27_s12, 128  ;;  %p103_p12 = scmp.lt.s32.totalorder %s27_s12, %s27_s12 }
  0x1b   :  { %p99_p11 = scmp.ne.s32.totalorder %s27_s12, %s98_s3  ;;  %p104_p13 = scmp.lt.s32.totalorder %s98_s3, %s98_s3 }
  0x1d   :  { %p105_p0 = por %p104_p13, %p103_p12 }
  0x1f   :  { %p106_p1 = pnand %p105_p0, %p99_p11 }
  0x21   :  { %109 = shalt.err (!%p106_p1)
}
  0x22   :  { %29 = dma.hbm_to_vmem [thread:$0]  %s193_s1, 128, %s27_s12, [#allocation6]  }
  0x23   :  { %132 = dma.done.wait [#allocation3], 16  }
  0x24   :  { %133 = vsyncadd [#allocation3], 4294967280 }
  0x25   :  { %134 = dma.done.wait [#allocation6], 128  }
  0x26   :  { %135 = vsyncadd [#allocation6], 4294967168  ;;  %s140_s5 = smov [#allocation7]   ;;  %v36_v0 = vld [vmem:[#allocation5] sm:$0xff]  ;;  %v62_v1 = vld [vmem:[#allocation2] ss:$0 sm:$0xff] }
  0x27   :  { %s52_s6 = sshll.u32 %s140_s5, 4  ;;  %v44_v2 = vmul.f32 %v62_v1, %v36_v0  ;;  %s53_s6 = int_to_ptr.vmem [resolvable:$true] %s52_s6 }
  0x28   :  { %s110_s7 = scalar_lea.vmem %s53_s6, 128  ;;  %p115_p3 = scmp.lt.s32.totalorder %s53_s6, %s53_s6 }
  0x29   :  { %45 = vst [vmem:[#allocation7] sm:$0xff] %v44_v2  ;;  %p111_p2 = scmp.ne.s32.totalorder %s53_s6, %s110_s7  ;;  %p116_p4 = scmp.lt.s32.totalorder %s110_s7, %s110_s7 }
  0x2b   :  { %p117_p5 = por %p116_p4, %p115_p3 }
  0x2d   :  { %p118_p6 = pnand %p117_p5, %p111_p2 }
  0x2f   :  { %121 = shalt.err (!%p118_p6)
}
  0x30   :  { %s122_s9 = scalar_lea.hbm %s194_s2, 128 }
  0x31   :  { %p123_p7 = scmp.ne.s32.totalorder %s194_s2, %s122_s9  ;;  %p126_p8 = scmp.lt.u32.totalorder %s122_s9, %s194_s2 }
  0x33   :  { %p128_p9 = pnand %p126_p8, %p123_p7 }
  0x35   :  { %131 = shalt.err (!%p128_p9)
}
  0x36   :  { %55 = dma.vmem_to_hbm [thread:$0]  %s53_s6, 128, %s194_s2, [#allocation4]  }
  0x37   :  { %136 = dma.done.wait [#allocation4], 128  }
  0x38   :  { %137 = vsyncadd [#allocation4], 4294967168 }
  0x39   :  { %59 = vsyncpa [#allocation3], 1 }
  0x3a   :  { %60 = vsyncpa [#allocation6], 1 }
  0x3b   :  { %61 = vsyncpa [#allocation4], 1 }

</bundles_post_ra>
